<compile_context>
chip_gen: v7x
topology: tpu7x:2x2x1
jax: 0.10.0
libtpu: 0.0.40
codegen_flags: <defaults>
</compile_context>

<pallas_src>
import jax
import jax.numpy as jnp
from jax.experimental import pallas as pl
from jax.experimental.pallas import tpu as pltpu

LANE = 128   # last-dim vreg width
SUB = 8      # sublane width


def _round_up(x, m):
    return (x + m - 1) // m * m


def _cdiv(a, b):
    return (a + b - 1) // b


def _pick_tile(dim, tile_max, align):
    """Pick (tile, padded_dim) with tile an `align`-multiple and
    padded_dim = n_tiles * tile, keeping padding to < align per tile
    (avoids the old 'round padded dim up to a full tile_max' blow-up)."""
    base = _round_up(dim, align)
    n_tiles = _cdiv(base, tile_max)
    tile = _round_up(_cdiv(base, n_tiles), align)
    return tile, n_tiles * tile


def linear_kernel(x_ref, w_ref, b_ref, o_ref):
    """One (tm, tn) output tile; K reduction runs over innermost grid axis 2.

    o_ref (f32) is VMEM-resident across the K loop (its block index is
    constant in k), so it doubles as the accumulator — no scratch needed.
    """
    k = pl.program_id(2)

    @pl.when(k == 0)
    def _():
        o_ref[...] = jnp.zeros_like(o_ref)

    # bf16 x bf16 -> f32 accumulate on the MXU.
    o_ref[...] += jnp.dot(
        x_ref[...], w_ref[...], preferred_element_type=jnp.float32
    )

    @pl.when(k == pl.num_programs(2) - 1)
    def _():
        # f32 bias epilogue; tn is a multiple of 128 -> lane-dense unmasked vst.
        o_ref[...] = o_ref[...] + b_ref[...]


def make_linear(weight, bias, *, tm_max=512, tn_max=256, tk_max=1024,
                compute_dtype=jnp.bfloat16, min_pallas_flops=1 << 21):
    """Build a forward fn for y = x @ W^T + b with persistent padded params.

    weight: [out_feat, in_feat]  (PyTorch nn.Linear convention)
    bias:   [out_feat]
    """
    out_feat, in_feat = weight.shape
    weight_f32 = weight.astype(jnp.float32)
    bias_f32 = bias.astype(jnp.float32)

    # Lane-aligned K / N tiling with minimal padding.
    tk, k_pad = _pick_tile(in_feat, tk_max, LANE)
    tn, n_pad = _pick_tile(out_feat, tn_max, LANE)

    # Persistent [K, N] bf16 weight (pre-transposed, zero-padded) + f32 bias row.
    w_kn = jnp.zeros((k_pad, n_pad), compute_dtype).at[:in_feat, :out_feat].set(
        weight.astype(compute_dtype).T
    )
    b_row = jnp.zeros((1, n_pad), jnp.float32).at[0, :out_feat].set(bias_f32)

    op_bytes = jnp.dtype(compute_dtype).itemsize

    def forward(x):
        batch = x.shape[0]

        # Tiny-shape fast path: padded kernel would waste >> useful MACs.
        if 2 * batch * in_feat * out_feat < min_pallas_flops:
            return (x.astype(jnp.float32) @ weight_f32.T + bias_f32).astype(x.dtype)

        # Bucket batch to a power of two (min 8 sublanes) -> few compiled variants.
        m_bucket = max(SUB, pl.next_power_of_2(batch))
        tm = min(tm_max, m_bucket)
        m_pad = _round_up(m_bucket, tm)

        grid_m = m_pad // tm
        grid_n = n_pad // tn
        grid_k = k_pad // tk

        # Single pad of the ragged M/K edges (padded K cols hit zero W rows).
        x_p = jnp.pad(
            x.astype(compute_dtype),
            ((0, m_pad - batch), (0, k_pad - in_feat)),
        )

        y_p = pl.pallas_call(
            linear_kernel,
            out_shape=jax.ShapeDtypeStruct((m_pad, n_pad), jnp.float32),
            grid_spec=pltpu.PrefetchScalarGridSpec(
                num_scalar_prefetch=0,
                grid=(grid_m, grid_n, grid_k),
                in_specs=[
                    pl.BlockSpec((tm, tk), lambda i, j, k: (i, k)),   # x tile
                    pl.BlockSpec((tk, tn), lambda i, j, k: (k, j)),   # W[K,N] tile
                    pl.BlockSpec((1, tn), lambda i, j, k: (0, j)),    # bias row
                ],
                out_specs=pl.BlockSpec((tm, tn), lambda i, j, k: (i, j)),
            ),
            compiler_params=pltpu.CompilerParams(
                # K must stay innermost + "arbitrary" for the in-place reduction.
                dimension_semantics=("parallel", "parallel", "arbitrary"),
            ),
            cost_estimate=pl.CostEstimate(
                flops=2 * m_pad * k_pad * n_pad,
                bytes_accessed=(
                    op_bytes * m_pad * k_pad * grid_n      # x re-read per N tile
                    + op_bytes * k_pad * n_pad * grid_m    # W re-read per M tile
                    + 4 * n_pad * grid_m                   # bias
                    + 4 * m_pad * n_pad                    # output write
                ),
                transcendentals=0,
            ),
        )(x_p, w_kn, b_row)

        # Slice the real rows/columns back out (padding was zeros).
        return y_p[:batch, :out_feat].astype(x.dtype)

    return jax.jit(forward)


if __name__ == "__main__":
    in_feat, out_feat = 8, 1
    batch = 8

    key = jax.random.PRNGKey(0)
    kx, kw, kb = jax.random.split(key, 3)

    # Deterministic params mirroring nn.Linear's U(-1/sqrt(in_feat), 1/sqrt(in_feat)).
    bound = 1.0 / (in_feat ** 0.5)
    weight = jax.random.uniform(kw, (out_feat, in_feat), jnp.float32, -bound, bound)
    bias = jax.random.uniform(kb, (out_feat,), jnp.float32, -bound, bound)

    x = jax.random.normal(kx, (batch, in_feat), jnp.float32)

    # min_pallas_flops=0 forces the Pallas path at this demo shape.
    forward = make_linear(weight, bias, min_pallas_flops=0)
    y = forward(x)
    jax.block_until_ready(y)

    # Reference check in plain JAX (bf16 operands -> relaxed tolerance).
    y_ref = x @ weight.T + bias
    assert y.shape == (batch, out_feat)
    assert jnp.allclose(y, y_ref, atol=2e-2, rtol=2e-2)

    print("KERNEL_OK")
</pallas_src>

<mosaic_0001>
module attributes {stable_mosaic.version = 11 : i64} {
  func.func @linear_kernel(%arg0: i32, %arg1: i32, %arg2: i32, %arg3: memref<8x128xbf16, #tpu.memory_space<vmem>>, %arg4: memref<128x128xbf16, #tpu.memory_space<vmem>>, %arg5: memref<1x128xf32, #tpu.memory_space<vmem>>, %arg6: memref<8x128xf32, #tpu.memory_space<vmem>>) attributes {dimension_semantics = [#tpu.dimension_semantics<parallel>, #tpu.dimension_semantics<parallel>, #tpu.dimension_semantics<arbitrary>], iteration_bounds = array<i64: 1, 1, 1>, scalar_prefetch = 0 : i64, scratch_operands = 0 : i64, tpu.core_type = #tpu.core_type<tc>, window_params = [{transform_indices = @transform_0, window_bounds = array<i64: 8, 128>}, {transform_indices = @transform_1, window_bounds = array<i64: 128, 128>}, {transform_indices = @transform_2, window_bounds = array<i64: 1, 128>}, {transform_indices = @transform_3, window_bounds = array<i64: 8, 128>}]} {
    %c0_i32 = arith.constant 0 : i32
    %0 = arith.cmpi eq, %arg2, %c0_i32 : i32
    %1 = arith.extui %0 : i1 to i32
    %c0_i32_0 = arith.constant 0 : i32
    %2 = arith.cmpi ne, %1, %c0_i32_0 : i32
    scf.if %2 {
      %cst_10 = arith.constant 0.000000e+00 : f32
      %12 = vector.broadcast %cst_10 : f32 to vector<8x128xf32>
      %c0_11 = arith.constant 0 : index
      %c0_12 = arith.constant 0 : index
      %13 = vector.load %arg6[%c0_11, %c0_12] : memref<8x128xf32, #tpu.memory_space<vmem>>, vector<8x128xf32>
      tpu.vector_store %arg6[%c0_11, %c0_12], %12 {strides = array<i32>} : memref<8x128xf32, #tpu.memory_space<vmem>>, vector<8x128xf32>,
    } else {
    }
    %c0 = arith.constant 0 : index
    %c0_1 = arith.constant 0 : index
    %3 = vector.load %arg6[%c0, %c0_1] : memref<8x128xf32, #tpu.memory_space<vmem>>, vector<8x128xf32>
    %c0_2 = arith.constant 0 : index
    %c0_3 = arith.constant 0 : index
    %4 = vector.load %arg3[%c0_2, %c0_3] : memref<8x128xbf16, #tpu.memory_space<vmem>>, vector<8x128xbf16>
    %c0_4 = arith.constant 0 : index
    %c0_5 = arith.constant 0 : index
    %5 = vector.load %arg4[%c0_4, %c0_5] : memref<128x128xbf16, #tpu.memory_space<vmem>>, vector<128x128xbf16>
    %cst = arith.constant dense<0.000000e+00> : vector<8x128xf32>
    %6 = tpu.matmul %4, %5, %cst {dimension_numbers = #tpu.dot_dimension_numbers<[1], [0], [0], [1], [0, 0, 1, 1], [], []>} : vector<8x128xbf16>, vector<128x128xbf16>, vector<8x128xf32> -> vector<8x128xf32>
    %7 = arith.addf %3, %6 : vector<8x128xf32>
    %c0_6 = arith.constant 0 : index
    %c0_7 = arith.constant 0 : index
    %8 = vector.load %arg6[%c0_6, %c0_7] : memref<8x128xf32, #tpu.memory_space<vmem>>, vector<8x128xf32>
    tpu.vector_store %arg6[%c0_6, %c0_7], %7 {strides = array<i32>} : memref<8x128xf32, #tpu.memory_space<vmem>>, vector<8x128xf32>,
    %c0_i32_8 = arith.constant 0 : i32
    %9 = arith.cmpi eq, %arg2, %c0_i32_8 : i32
    %10 = arith.extui %9 : i1 to i32
    %c0_i32_9 = arith.constant 0 : i32
    %11 = arith.cmpi ne, %10, %c0_i32_9 : i32
    scf.if %11 {
      %c0_10 = arith.constant 0 : index
      %c0_11 = arith.constant 0 : index
      %12 = vector.load %arg6[%c0_10, %c0_11] : memref<8x128xf32, #tpu.memory_space<vmem>>, vector<8x128xf32>
      %c0_12 = arith.constant 0 : index
      %c0_13 = arith.constant 0 : index
      %13 = vector.load %arg5[%c0_12, %c0_13] : memref<1x128xf32, #tpu.memory_space<vmem>>, vector<1x128xf32>
      %14 = vector.broadcast %13 : vector<1x128xf32> to vector<8x128xf32>
      %15 = arith.addf %12, %14 : vector<8x128xf32>
      %c0_14 = arith.constant 0 : index
      %c0_15 = arith.constant 0 : index
      %16 = vector.load %arg6[%c0_14, %c0_15] : memref<8x128xf32, #tpu.memory_space<vmem>>, vector<8x128xf32>
      tpu.vector_store %arg6[%c0_14, %c0_15], %15 {strides = array<i32>} : memref<8x128xf32, #tpu.memory_space<vmem>>, vector<8x128xf32>,
    } else {
    }
    return
  }
  func.func @transform_0(%arg0: i32, %arg1: i32, %arg2: i32) -> (i32, i32) {
    %c0_i32 = arith.constant 0 : i32
    return %arg0, %arg2 : i32, i32
  }
  func.func @transform_1(%arg0: i32, %arg1: i32, %arg2: i32) -> (i32, i32) {
    %c0_i32 = arith.constant 0 : i32
    return %arg2, %arg1 : i32, i32
  }
  func.func @transform_2(%arg0: i32, %arg1: i32, %arg2: i32) -> (i32, i32) {
    %c0_i32 = arith.constant 0 : i32
    %c0_i32_0 = arith.constant 0 : i32
    return %c0_i32, %arg1 : i32, i32
  }
  func.func @transform_3(%arg0: i32, %arg1: i32, %arg2: i32) -> (i32, i32) {
    %c0_i32 = arith.constant 0 : i32
    return %arg0, %arg1 : i32, i32
  }
}

</mosaic_0001>

<bundles_post_ra>
// kernel: forward.1
= control target key start
LH: loop header
LB: loop body
LE: loop exit
PB: predicated region body
PF: predicated region fallthrough
CT: control target
= control target key end

     0   :  { %8 = vsyncpa [#allocation3], 0  ;;  %s235_s12 = smov [#allocation2]   ;;  %s281_s0 = inlined_call_operand.vmem [shape: bf16[8,128], index: 0, kind: input, shape index: {}]   ;;  %s282_s1 = inlined_call_operand.hbm [shape: bf16[128,128], index: 1, kind: input, shape index: {}]   ;;  %s283_s2 = inlined_call_operand.vmem [shape: f32[1,128], index: 2, kind: input, shape index: {}]   ;;  %s284_s3 = inlined_call_operand.vmem [shape: f32[8,128], index: 3, kind: output, shape index: {}]  }
   0x1   :  { %s16_s13 = sshll.u32 %s235_s12, 4  ;;  %s211_s16 = scalar_lea.hbm %s282_s1, 1024  ;;  %s17_s13 = int_to_ptr.vmem [resolvable:$true] %s16_s13 }
   0x2   :  { %p212_p0 = scmp.ne.s32.totalorder %s282_s1, %s211_s16  ;;  %p215_p1 = scmp.lt.u32.totalorder %s211_s16, %s282_s1 }
   0x4   :  { %p217_p2 = pnand %p215_p1, %p212_p0 }
   0x6   :  { %220 = shalt.err (!%p217_p2)
}
   0x7   :  { %s221_s21 = scalar_lea.vmem %s17_s13, 1024  ;;  %p226_p4 = scmp.lt.s32.totalorder %s17_s13, %s17_s13 }
   0x8   :  { %p222_p3 = scmp.ne.s32.totalorder %s17_s13, %s221_s21  ;;  %p227_p5 = scmp.lt.s32.totalorder %s221_s21, %s221_s21 }
   0xa   :  { %p228_p6 = por %p227_p5, %p226_p4 }
   0xc   :  { %p229_p7 = pnand %p228_p6, %p222_p3 }
   0xe   :  { %232 = shalt.err (!%p229_p7)
}
   0xf   :  { %s236_s22 = smov 64   ;;  %s237_s23 = smov 4  }
  0x10   :  { %22 = dma.hbm_to_vmem [thread:$0]  %s282_s1, 1024, %s17_s13, [#allocation3], %s236_s22, %s236_s22, %s237_s23  }
  0x11   :  { %233 = dma.done.wait [#allocation3], 1024  }
  0x12   :  { %234 = vsyncadd [#allocation3], 4294966272  ;;  %v238_v0 = vmov 0.0   ;;  %vm239_vm0 = vmmov 0   ;;  %v203_v1 = vld [vmem:[#allocation2] sm:$0xff]   ;;  %v204_v2 = vld [vmem:[#allocation2 + $0x8] sm:$0xff]  }
  0x13   :  { %178 = vmatprep.subr.bf16.mxu0 %v238_v0  ;;  %194 = vmatprep.mubr.msk.bf16.mxu0 %vm239_vm0, %v238_v0  ;;  %v205_v3 = vld [vmem:[#allocation2 + $0x10] sm:$0xff]   ;;  %v206_v4 = vld [vmem:[#allocation2 + $0x18] sm:$0xff]   ;;  %v207_v5 = vld [vmem:[#allocation2 + $0x20] sm:$0xff]  }
  0x14   :  { %179 = vmatpush3.bf16.msra.mxu0 %v203_v1  ;;  %v208_v6 = vld [vmem:[#allocation2 + $0x28] sm:$0xff]   ;;  %v209_v7 = vld [vmem:[#allocation2 + $0x30] sm:$0xff]   ;;  %v210_v8 = vld [vmem:[#allocation2 + $0x38] sm:$0xff]  }
  0x15   :  { %180 = vmatprep.subr.bf16.mxu0 %v238_v0  ;;  %v35_v9 = vld [vmem:[%s281_s0] sm:$0xf] }
  0x16   :  { %v168_v11 = vld [vmem:[%s283_s2] ss:$0 sm:$0xff] }
  0x18   :  { %181 = vmatpush3.bf16.msra.mxu0 %v204_v2 }
  0x19   :  { %182 = vmatprep.subr.bf16.mxu0 %v238_v0 }
  0x1c   :  { %183 = vmatpush3.bf16.msra.mxu0 %v205_v3 }
  0x1d   :  { %184 = vmatprep.subr.bf16.mxu0 %v238_v0 }
  0x20   :  { %185 = vmatpush3.bf16.msra.mxu0 %v206_v4 }
  0x21   :  { %186 = vmatprep.subr.bf16.mxu0 %v238_v0 }
  0x24   :  { %187 = vmatpush3.bf16.msra.mxu0 %v207_v5 }
  0x25   :  { %188 = vmatprep.subr.bf16.mxu0 %v238_v0 }
  0x28   :  { %189 = vmatpush3.bf16.msra.mxu0 %v208_v6 }
  0x29   :  { %190 = vmatprep.subr.bf16.mxu0 %v238_v0 }
  0x2c   :  { %191 = vmatpush3.bf16.msra.mxu0 %v209_v7 }
  0x2d   :  { %192 = vmatprep.subr.bf16.mxu0 %v238_v0 }
  0x30   :  { %193 = vmatpush3.bf16.msra.mxu0 %v210_v8 }
  0x33   :  { %195 = vmatmul.mubr.bf16.vlgmr.msra.gmra.mrb[0].mxu0 %v35_v9 }
 0x106   :  { %v134_v10 = vpop.f32.mrb[0].mxu0 }
 0x107   :  { %v196_v12 = vpop.f32.mrb[1].mxu0  ;;  %v153_v14 = vadd.f32 %v168_v11, %v134_v10 }
 0x108   :  { %v137_v13 = vpop.f32.mrb[2].mxu0 }
 0x109   :  { %v197_v15 = vpop.f32.mrb[3].mxu0  ;;  %154 = vst [vmem:[%s284_s3] sm:$0xff] %v153_v14 }
 0x10a   :  { %159 = vsyncpa [#allocation3], 1 }

</bundles_post_ra>
